<compile_context>
chip_gen: v5e
topology: v5e:2x2
jax: 0.10.0
libtpu: 0.0.40
codegen_flags: <defaults>
</compile_context>

<pallas_src>
import functools

import jax
import jax.numpy as jnp
from jax import lax
from jax.experimental import pallas as pl
from jax.experimental.pallas import tpu as pltpu

LANE = 128
SUBLANE = 8
_ALIGN_ROWS = 16        # rows alignment: valid (8,128) f32 and (16,128) bf16 block tiling
_MAX_BLOCK_ROWS = 8192  # cap: bounds f32 intermediate footprint in VMEM
_VMEM_LIMIT = 48 * 1024 * 1024


def _mse_partial_kernel(p_ref, t_ref, o_ref, *, block_rows, last_rows):
    # d / sq over the whole (block_rows, LANE) tile: 3 VPU ops per element.
    d = p_ref[...].astype(jnp.float32) - t_ref[...].astype(jnp.float32)
    sq = d * d

    def full_reduce(x, nrows):
        # (nrows, LANE) -> (SUBLANE, LANE) with pure VPU adds (nrows % 8 == 0).
        return x.reshape(nrows // SUBLANE, SUBLANE, LANE).sum(axis=0)

    def store(partial8):
        # One cross-sublane (XLU) reduce per block: (8,128) -> (1,128).
        o_ref[0] = jnp.sum(partial8, axis=0, keepdims=True)

    if last_rows == block_rows:
        # Fast path: every block is fully valid -> no masking anywhere.
        store(full_reduce(sq, block_rows))
    else:
        is_last = pl.program_id(0) == pl.num_programs(0) - 1

        @pl.when(jnp.logical_not(is_last))
        def _():
            store(full_reduce(sq, block_rows))

        @pl.when(is_last)
        def _():
            # Only `last_rows` rows of this block are real data (static int).
            pre = (last_rows // SUBLANE) * SUBLANE       # fully-valid 8-row groups
            tail_rows = last_rows - pre                  # 0..7 partially valid rows
            acc = jnp.zeros((SUBLANE, LANE), jnp.float32)
            if pre > 0:
                acc = acc + full_reduce(sq[:pre], pre)
            if tail_rows > 0:
                rmask = (
                    lax.broadcasted_iota(jnp.int32, (SUBLANE, LANE), 0) < tail_rows
                )
                acc = acc + jnp.where(rmask, sq[pre:pre + SUBLANE], 0.0)
            store(acc)


def mse_loss_pallas(pred, target, *, tile_bytes=4 << 20):
    assert pred.shape == target.shape, "pred/target shape mismatch"
    n_elem = int(pred.size)
    if n_elem == 0:
        # Matches torch F.mse_loss on empty input (NaN).
        return jnp.float32(jnp.nan)

    p = pred.reshape(-1)
    t = target.reshape(-1)

    # Split off the sub-128-element tail (if any) and handle it in plain JAX,
    # so the kernel only ever sees whole 128-lane rows and the wrapper never
    # does a full-array jnp.pad copy.
    aligned = (n_elem // LANE) * LANE
    if aligned != n_elem:
        tail_sse = jnp.sum(
            (p[aligned:].astype(jnp.float32) - t[aligned:].astype(jnp.float32)) ** 2
        )
        p = p[:aligned]
        t = t[:aligned]
    else:
        tail_sse = jnp.float32(0.0)

    if aligned == 0:
        return tail_sse / jnp.float32(n_elem)

    rows = aligned // LANE

    # Dtype-aware tile: ~tile_bytes per input tile (8192 rows f32), capped so
    # the kernel's f32 intermediates stay comfortably inside scoped VMEM.
    itemsize = max(p.dtype.itemsize, t.dtype.itemsize)
    block_rows = max(_ALIGN_ROWS, tile_bytes // (LANE * itemsize))
    block_rows = min(block_rows, _MAX_BLOCK_ROWS)
    block_rows = (block_rows // _ALIGN_ROWS) * _ALIGN_ROWS
    # Don't allocate tiles bigger than the data needs.
    block_rows = min(block_rows, pl.cdiv(rows, _ALIGN_ROWS) * _ALIGN_ROWS)

    num_blocks = pl.cdiv(rows, block_rows)
    if num_blocks == 1 and rows >= 2 * _ALIGN_ROWS:
        # Guarantee >= 2 blocks so the "parallel" grid splits across both of
        # v7x's TensorCores (each then streams its own half of HBM traffic).
        block_rows = pl.cdiv(pl.cdiv(rows, 2), _ALIGN_ROWS) * _ALIGN_ROWS
        num_blocks = pl.cdiv(rows, block_rows)

    # Valid rows in the last (possibly ragged) block -- static Python int.
    last_rows = rows - (num_blocks - 1) * block_rows

    kernel = functools.partial(
        _mse_partial_kernel, block_rows=block_rows, last_rows=last_rows
    )

    bytes_accessed = (
        aligned * (p.dtype.itemsize + t.dtype.itemsize) + num_blocks * LANE * 4
    )

    partials = pl.pallas_call(
        kernel,
        out_shape=jax.ShapeDtypeStruct((num_blocks, 1, LANE), jnp.float32),
        grid_spec=pltpu.PrefetchScalarGridSpec(
            num_scalar_prefetch=0,
            grid=(num_blocks,),
            in_specs=[
                pl.BlockSpec((block_rows, LANE), lambda i: (i, 0)),
                pl.BlockSpec((block_rows, LANE), lambda i: (i, 0)),
            ],
            out_specs=pl.BlockSpec((1, 1, LANE), lambda i: (i, 0, 0)),
        ),
        compiler_params=pltpu.CompilerParams(
            dimension_semantics=("parallel",),
            vmem_limit_bytes=_VMEM_LIMIT,
            allow_input_fusion=[True, True],
        ),
        cost_estimate=pl.CostEstimate(
            flops=3 * aligned,
            transcendentals=0,
            bytes_accessed=bytes_accessed,
        ),
    )(p.reshape(rows, LANE), t.reshape(rows, LANE))

    # Tiny final reduction over the (num_blocks, 1, 128) partial slab.
    sse = jnp.sum(partials, dtype=jnp.float32) + tail_sse
    return sse / jnp.float32(n_elem)


if __name__ == "__main__":
    key = jax.random.PRNGKey(0)
    k1, k2, k3, k4 = jax.random.split(key, 4)

    # Shapes consistent with a typical prediction/target pair.
    pred = jax.random.normal(k1, (2, 4, 16, 16), dtype=jnp.float32)
    target = jax.random.normal(k2, (2, 4, 16, 16), dtype=jnp.float32)
    loss = jax.block_until_ready(mse_loss_pallas(pred, target))
    ref = jnp.mean((pred - target) ** 2)
    assert jnp.allclose(loss, ref, rtol=1e-5, atol=1e-6), (loss, ref)

    # Non-lane-aligned size: exercises the ragged last block + wrapper tail.
    p2 = jax.random.normal(k3, (5, 300), dtype=jnp.float32)
    t2 = jax.random.normal(k4, (5, 300), dtype=jnp.float32)
    loss2 = jax.block_until_ready(mse_loss_pallas(p2, t2))
    ref2 = jnp.mean((p2 - t2) ** 2)
    assert jnp.allclose(loss2, ref2, rtol=1e-5, atol=1e-6), (loss2, ref2)

    print("KERNEL_OK")
</pallas_src>

<mosaic_0001>
module attributes {stable_mosaic.version = 11 : i64} {
  func.func @_mse_partial_kernel(%arg0: i32, %arg1: memref<16x128xf32, #tpu.memory_space<vmem>>, %arg2: memref<16x128xf32, #tpu.memory_space<vmem>>, %arg3: memref<1x1x128xf32, #tpu.memory_space<vmem>>) attributes {dimension_semantics = [#tpu.dimension_semantics<parallel>], iteration_bounds = array<i64: 1>, scalar_prefetch = 0 : i64, scratch_operands = 0 : i64, tpu.core_type = #tpu.core_type<tc>, window_params = [{transform_indices = @transform_0, window_bounds = array<i64: 16, 128>}, {transform_indices = @transform_1, window_bounds = array<i64: 16, 128>}, {transform_indices = @transform_2, window_bounds = array<i64: 1, 1, 128>}]} {
    %c0 = arith.constant 0 : index
    %c0_0 = arith.constant 0 : index
    %0 = vector.load %arg1[%c0, %c0_0] : memref<16x128xf32, #tpu.memory_space<vmem>>, vector<16x128xf32>
    %c0_1 = arith.constant 0 : index
    %c0_2 = arith.constant 0 : index
    %1 = vector.load %arg2[%c0_1, %c0_2] : memref<16x128xf32, #tpu.memory_space<vmem>>, vector<16x128xf32>
    %2 = arith.subf %0, %1 : vector<16x128xf32>
    %3 = arith.mulf %2, %2 : vector<16x128xf32>
    %4 = vector.shape_cast %3 : vector<16x128xf32> to vector<2x8x128xf32>
    %cst = arith.constant dense<0.000000e+00> : vector<8x128xf32>
    %5 = vector.multi_reduction <add>, %4, %cst [0] : vector<2x8x128xf32> to vector<8x128xf32>
    %cst_3 = arith.constant dense<0.000000e+00> : vector<128xf32>
    %6 = vector.multi_reduction <add>, %5, %cst_3 [0] : vector<8x128xf32> to vector<128xf32>
    %7 = vector.shape_cast %6 : vector<128xf32> to vector<1x128xf32>
    %c0_4 = arith.constant 0 : index
    %c0_5 = arith.constant 0 : index
    %c0_6 = arith.constant 0 : index
    %8 = vector.load %arg3[%c0_4, %c0_5, %c0_6] : memref<1x1x128xf32, #tpu.memory_space<vmem>>, vector<1x1x128xf32>
    %9 = vector.shape_cast %8 : vector<1x1x128xf32> to vector<1x128xf32>
    %10 = vector.shape_cast %7 : vector<1x128xf32> to vector<1x1x128xf32>
    tpu.vector_store %arg3[%c0_4, %c0_5, %c0_6], %10 {strides = array<i32>} : memref<1x1x128xf32, #tpu.memory_space<vmem>>, vector<1x1x128xf32>,
    return
  }
  func.func @transform_0(%arg0: i32) -> (i32, i32) {
    %c0_i32 = arith.constant 0 : i32
    %c0_i32_0 = arith.constant 0 : i32
    return %arg0, %c0_i32 : i32, i32
  }
  func.func @transform_1(%arg0: i32) -> (i32, i32) {
    %c0_i32 = arith.constant 0 : i32
    %c0_i32_0 = arith.constant 0 : i32
    return %arg0, %c0_i32 : i32, i32
  }
  func.func @transform_2(%arg0: i32) -> (i32, i32, i32) {
    %c0_i32 = arith.constant 0 : i32
    %c0_i32_0 = arith.constant 0 : i32
    %c0_i32_1 = arith.constant 0 : i32
    return %arg0, %c0_i32, %c0_i32_0 : i32, i32, i32
  }
}

</mosaic_0001>

<bundles_post_ra>
// kernel: tpu_custom_call.1
= control target key start
LH: loop header
LB: loop body
LE: loop exit
PB: predicated region body
PF: predicated region fallthrough
CT: control target
= control target key end

     0   :  { %7 = vsyncpa [#allocation3], 0  ;;  %s190_s0 = inlined_call_operand.hbm [shape: f32[16,128], index: 0, kind: input, shape index: {}]   ;;  %s191_s1 = inlined_call_operand.hbm [shape: f32[16,128], index: 1, kind: input, shape index: {}]   ;;  %s192_s2 = inlined_call_operand.hbm [shape: f32[1,1,128], index: 2, kind: output, shape index: {}]  }
   0x1   :  { %8 = vsyncpa [#allocation6], 0 }
   0x2   :  { %9 = vsyncpa [#allocation4], 0  ;;  %s14_s11 = sshll.u32 %s190_s0, 4  ;;  %s161_s12 = smov [#allocation2]   ;;  %s15_s11 = int_to_ptr.hbm [resolvable:$true] %s14_s11 }
   0x3   :  { %s16_s13 = sshll.u32 %s161_s12, 4  ;;  %s27_s16 = sshll.u32 %s191_s1, 4  ;;  %s17_s13 = int_to_ptr.vmem [resolvable:$true] %s16_s13  ;;  %s28_s16 = int_to_ptr.hbm [resolvable:$true] %s27_s16 }
   0x4   :  { %s162_s17 = smov 128   ;;  %s163_s18 = smov 8  }
   0x5   :  { %22 = dma.hbm_to_vmem [thread:$0]  %s15_s11, 256, %s17_s13, [#allocation3], %s162_s17, %s162_s17, %s163_s18  }
   0x6   :  { %s164_s19 = smov [#allocation5]  }
   0x7   :  { %s29_s20 = sshll.u32 %s164_s19, 4  ;;  %s30_s20 = int_to_ptr.vmem [resolvable:$true] %s29_s20 }
   0x8   :  { %35 = dma.hbm_to_vmem [thread:$0]  %s28_s16, 256, %s30_s20, [#allocation6], %s162_s17, %s162_s17, %s163_s18  }
   0x9   :  { %155 = dma.done.wait [#allocation3], 256  }
   0xa   :  { %156 = vsyncadd [#allocation3], 4294967040 }
   0xb   :  { %157 = dma.done.wait [#allocation6], 256  }
   0xc   :  { %158 = vsyncadd [#allocation6], 4294967040  ;;  %v44_v0 = vld [vmem:[#allocation2] sm:$0xff]  ;;  %v45_v1 = vld [vmem:[#allocation2 + $0x8] sm:$0xff]  ;;  %s165_s0 = smov [#allocation7]   ;;  %s67_s23 = sshll.u32 %s192_s2, 4  ;;  %s68_s23 = int_to_ptr.hbm [resolvable:$true] %s67_s23 }
   0xd   :  { %v46_v2 = vld [vmem:[#allocation5] sm:$0xff]  ;;  %v47_v3 = vld [vmem:[#allocation5 + $0x8] sm:$0xff]  ;;  %s65_s1 = sshll.u32 %s165_s0, 4  ;;  %s66_s1 = int_to_ptr.vmem [resolvable:$true] %s65_s1 }
   0xe   :  { %v48_v4 = vsub.f32 %v44_v0, %v46_v2  ;;  %v49_v5 = vsub.f32 %v45_v1, %v47_v3 }
  0x10   :  { %v50_v6 = vmul.f32 %v48_v4, %v48_v4  ;;  %v51_v7 = vmul.f32 %v49_v5, %v49_v5 }
  0x12   :  { %v52_v8 = vadd.f32 %v51_v7, %v50_v6 }
  0x14   :  { %v53_v9 = vrot.slane %v52_v8, 4 }
  0x16   :  { %v54_v10 = vadd.f32 %v53_v9, %v52_v8 }
  0x18   :  { %v55_v11 = vrot.slane %v54_v10, 2 }
  0x1a   :  { %v56_v12 = vadd.f32 %v55_v11, %v54_v10 }
  0x1c   :  { %v57_v13 = vrot.slane %v56_v12, 1 }
  0x1e   :  { %v58_v14 = vadd.f32 %v57_v13, %v56_v12 }
  0x20   :  { %59 = vst [vmem:[#allocation7] sm:$0x1] %v58_v14 }
  0x21   :  { %70 = dma.vmem_to_hbm [thread:$0]  %s66_s1, 16, %s68_s23, [#allocation4]  }
  0x22   :  { %159 = dma.done.wait [#allocation4], 16  }
  0x23   :  { %160 = vsyncadd [#allocation4], 4294967280 }
  0x24   :  { %75 = vsyncpa [#allocation3], 1 }
  0x25   :  { %76 = vsyncpa [#allocation6], 1 }
  0x26   :  { %77 = vsyncpa [#allocation4], 1 }

</bundles_post_ra>
